<compile_context>
chip_gen: v7x
topology: tpu7x:2x2x1
jax: 0.10.0
libtpu: 0.0.40
codegen_flags: <defaults>
</compile_context>

<pallas_src>
import jax
import jax.numpy as jnp
from jax import lax
from jax.experimental import pallas as pl
from jax.experimental.pallas import tpu as pltpu


def _make_vicreg_kernel(batch):
    inv_b = 1.0 / batch
    inv_bm1 = 1.0 / (batch - 1)
    dn = (((0,), (0,)), ((), ()))  # contract over axis 0 (batch) of both operands

    def kernel(pi_ref, pj_ref, x_i_ref, x_j_ref, y_i_ref, y_j_ref, out_ref,
               acc_x, acc_y, sx_i, sx_j, sy_i, sy_j, sx2_i, sy2_i, sd2_i):
        p = pl.program_id(0)
        k = pl.program_id(1)
        nk = pl.num_programs(1)

        @pl.when(k == 0)
        def _init():
            acc_x[...] = jnp.zeros_like(acc_x)
            acc_y[...] = jnp.zeros_like(acc_y)
            for r in (sx_i, sx_j, sy_i, sy_j, sx2_i, sy2_i, sd2_i):
                r[...] = jnp.zeros_like(r)

        xi = x_i_ref[...]
        xj = x_j_ref[...]
        yi = y_i_ref[...]
        yj = y_j_ref[...]

        # Gram blocks X_i^T X_j accumulated over batch tiles (MXU, no transpose).
        acc_x[...] += lax.dot_general(xi, xj, dn, preferred_element_type=jnp.float32)
        acc_y[...] += lax.dot_general(yi, yj, dn, preferred_element_type=jnp.float32)

        # Streaming per-feature statistics for the single-pass algebra.
        sx_i[...] += jnp.sum(xi, axis=0, keepdims=True)
        sx_j[...] += jnp.sum(xj, axis=0, keepdims=True)
        sy_i[...] += jnp.sum(yi, axis=0, keepdims=True)
        sy_j[...] += jnp.sum(yj, axis=0, keepdims=True)
        sx2_i[...] += jnp.sum(xi * xi, axis=0, keepdims=True)
        sy2_i[...] += jnp.sum(yi * yi, axis=0, keepdims=True)
        d = xi - yi
        sd2_i[...] += jnp.sum(d * d, axis=0, keepdims=True)

        @pl.when(k == nk - 1)
        def _finalize():
            is_diag = (pi_ref[p] == pj_ref[p]).astype(jnp.float32)

            # cov block = (X_i^T X_j - s_i s_j^T / B) / (B - 1)
            corr_x = lax.dot_general(sx_i[...], sx_j[...], dn,
                                     preferred_element_type=jnp.float32)
            corr_y = lax.dot_general(sy_i[...], sy_j[...], dn,
                                     preferred_element_type=jnp.float32)
            cov_x = (acc_x[...] - corr_x * inv_b) * inv_bm1
            cov_y = (acc_y[...] - corr_y * inv_b) * inv_bm1
            # ||off_diag||^2 = ||cov||_F^2 - ||diag||^2, accumulated block-wise.
            # Off-diagonal (i < j) pairs appear once in the triangular
            # enumeration but twice in the full matrix -> weight 2.
            frob = jnp.sum(cov_x * cov_x) + jnp.sum(cov_y * cov_y)
            frob = (2.0 - is_diag) * frob

            # diag(cov) == per-feature variance, recovered from the sums.
            var_x = (sx2_i[...] - sx_i[...] * sx_i[...] * inv_b) * inv_bm1
            var_y = (sy2_i[...] - sy_i[...] * sy_i[...] * inv_b) * inv_bm1
            diag2 = is_diag * (jnp.sum(var_x * var_x) + jnp.sum(var_y * var_y))

            std_x = jnp.sqrt(var_x + 0.01)
            std_y = jnp.sqrt(var_y + 0.01)
            relu_sum = (jnp.sum(jnp.maximum(1.0 - std_x, 0.0))
                        + jnp.sum(jnp.maximum(1.0 - std_y, 0.0)))
            # Each feature-row block i appears exactly once as a diagonal
            # pair, so std / mse contributions are gated on is_diag to avoid
            # replication across pairs.
            std_part = is_diag * relu_sum
            repr_part = is_diag * jnp.sum(sd2_i[...])

            # Lane-dense (8, 128) output tile; scalars live at lane 0,
            # sublanes 0..3: [mse, std_relu, frobenius, diag^2].
            sub = lax.broadcasted_iota(jnp.int32, (8, 128), 0)
            lane = lax.broadcasted_iota(jnp.int32, (8, 128), 1)
            at0 = lane == 0
            tile = jnp.where((sub == 0) & at0, repr_part,
                   jnp.where((sub == 1) & at0, std_part,
                   jnp.where((sub == 2) & at0, frob,
                   jnp.where((sub == 3) & at0, diag2, 0.0))))
            out_ref[...] = tile.reshape(1, 8, 128)

    return kernel


def _choose_tile(dim, cap, align):
    """Largest `align`-aligned divisor of `dim` that is <= cap, else full dim."""
    if dim <= cap:
        return dim
    t = (cap // align) * align
    while t >= align:
        if dim % t == 0:
            return t
        t -= align
    return dim  # fall back to one block spanning the whole dim


def vicreg_loss(x, y, sim_coeff=1.0, std_coeff=1.0, cov_coeff=0.05,
                block_b=None, block_f=None):
    assert x.shape == y.shape and x.ndim == 2
    B, F = x.shape
    assert B >= 2, "VICReg var/cov terms need batch >= 2"

    # tb up to 512, tf up to 1024 (multiples of 256 for v6e/v7x MXU and 128
    # for v5e); with f32 double-buffered streams + two (tf, tf) accumulators
    # this stays ~24 MiB, under v7x's 64 MiB VMEM.
    tb = block_b if block_b is not None else _choose_tile(B, 512, 8)
    tf = block_f if block_f is not None else _choose_tile(F, 1024, 128)
    assert B % tb == 0 and F % tf == 0, (B, F, tb, tf)
    n_b, n_f = B // tb, F // tf

    # Triangular (i <= j) block-pair enumeration: cov is symmetric, so only
    # the upper-triangular Gram blocks are computed (halves MXU + HBM work).
    pair_i, pair_j = [], []
    for i in range(n_f):
        for j in range(i, n_f):
            pair_i.append(i)
            pair_j.append(j)
    n_pairs = len(pair_i)
    pair_i = jnp.asarray(pair_i, jnp.int32)
    pair_j = jnp.asarray(pair_j, jnp.int32)

    xf = jnp.asarray(x, jnp.float32)
    yf = jnp.asarray(y, jnp.float32)

    kernel = _make_vicreg_kernel(B)

    grid_spec = pltpu.PrefetchScalarGridSpec(
        num_scalar_prefetch=2,
        grid=(n_pairs, n_b),
        in_specs=[
            pl.BlockSpec((tb, tf), lambda p, k, pi, pj: (k, pi[p])),  # x, row block
            pl.BlockSpec((tb, tf), lambda p, k, pi, pj: (k, pj[p])),  # x, col block
            pl.BlockSpec((tb, tf), lambda p, k, pi, pj: (k, pi[p])),  # y, row block
            pl.BlockSpec((tb, tf), lambda p, k, pi, pj: (k, pj[p])),  # y, col block
        ],
        out_specs=pl.BlockSpec((1, 8, 128), lambda p, k, pi, pj: (p, 0, 0)),
        scratch_shapes=[
            pltpu.VMEM((tf, tf), jnp.float32),   # acc_x
            pltpu.VMEM((tf, tf), jnp.float32),   # acc_y
            pltpu.VMEM((1, tf), jnp.float32),    # sum x_i
            pltpu.VMEM((1, tf), jnp.float32),    # sum x_j
            pltpu.VMEM((1, tf), jnp.float32),    # sum y_i
            pltpu.VMEM((1, tf), jnp.float32),    # sum y_j
            pltpu.VMEM((1, tf), jnp.float32),    # sum x_i^2
            pltpu.VMEM((1, tf), jnp.float32),    # sum y_i^2
            pltpu.VMEM((1, tf), jnp.float32),    # sum (x_i - y_i)^2
        ],
    )

    partials = pl.pallas_call(
        kernel,
        out_shape=jax.ShapeDtypeStruct((n_pairs, 8, 128), jnp.float32),
        grid_spec=grid_spec,
        compiler_params=pltpu.CompilerParams(
            dimension_semantics=("parallel", "arbitrary"),
            vmem_limit_bytes=48 * 1024 * 1024,
        ),
    )(pair_i, pair_j, xf, xf, yf, yf)

    # Tiny final combination of the per-pair partial sums.
    repr_sum = jnp.sum(partials[:, 0, 0])
    relu_sum = jnp.sum(partials[:, 1, 0])
    frob_sum = jnp.sum(partials[:, 2, 0])
    diag_sum = jnp.sum(partials[:, 3, 0])

    repr_loss = repr_sum / (B * F)
    std_loss = relu_sum / (2.0 * F)
    cov_loss = (frob_sum - diag_sum) / F
    return sim_coeff * repr_loss + std_coeff * std_loss + cov_coeff * cov_loss


def _vicreg_ref(x, y, sim_coeff=1.0, std_coeff=1.0, cov_coeff=0.05):
    # pure-JAX reference (full-precision matmuls) for sanity checking
    bsz, nf = x.shape
    repr_loss = jnp.mean((x - y) ** 2)
    xc = x - x.mean(axis=0)
    yc = y - y.mean(axis=0)
    std_x = jnp.sqrt(xc.var(axis=0, ddof=1) + 0.01)
    std_y = jnp.sqrt(yc.var(axis=0, ddof=1) + 0.01)
    std_loss = (jnp.mean(jax.nn.relu(1 - std_x)) / 2
                + jnp.mean(jax.nn.relu(1 - std_y)) / 2)
    hp = lax.Precision.HIGHEST
    cov_x = jnp.matmul(xc.T, xc, precision=hp) / (bsz - 1)
    cov_y = jnp.matmul(yc.T, yc, precision=hp) / (bsz - 1)
    mask = 1.0 - jnp.eye(nf)
    cov_loss = (jnp.sum((cov_x * mask) ** 2) / nf
                + jnp.sum((cov_y * mask) ** 2) / nf)
    return sim_coeff * repr_loss + std_coeff * std_loss + cov_coeff * cov_loss


if __name__ == "__main__":
    key = jax.random.PRNGKey(0)
    kx, ky = jax.random.split(key)

    # Small shape consistent with the module's (batch, num_features) inputs:
    # single-block path (grid = (1 pair, 1 batch tile)).
    bsz, num_features = 8, 32
    x = jax.random.normal(kx, (bsz, num_features), dtype=jnp.float32)
    y = jax.random.normal(ky, (bsz, num_features), dtype=jnp.float32)
    loss = jax.block_until_ready(vicreg_loss(x, y))
    ref = jax.block_until_ready(_vicreg_ref(x, y))
    assert jnp.allclose(loss, ref, rtol=1e-4, atol=1e-5), (loss, ref)

    # Second case exercising the tiled triangular path: 3 block pairs
    # (two diagonal, one off-diagonal with 2x weight), 2 batch tiles.
    bsz2, nf2 = 64, 256
    x2 = jax.random.normal(kx, (bsz2, nf2), dtype=jnp.float32)
    y2 = jax.random.normal(ky, (bsz2, nf2), dtype=jnp.float32)
    loss2 = jax.block_until_ready(vicreg_loss(x2, y2, block_b=32, block_f=128))
    ref2 = jax.block_until_ready(_vicreg_ref(x2, y2))
    assert jnp.allclose(loss2, ref2, rtol=1e-4, atol=1e-4), (loss2, ref2)

    print("KERNEL_OK")
</pallas_src>

<mosaic_0001>
module attributes {stable_mosaic.version = 11 : i64} {
  func.func @kernel(%arg0: i32, %arg1: i32, %arg2: memref<1xi32, #tpu.memory_space<smem>>, %arg3: memref<1xi32, #tpu.memory_space<smem>>, %arg4: memref<8x32xf32, #tpu.memory_space<vmem>>, %arg5: memref<8x32xf32, #tpu.memory_space<vmem>>, %arg6: memref<8x32xf32, #tpu.memory_space<vmem>>, %arg7: memref<8x32xf32, #tpu.memory_space<vmem>>, %arg8: memref<1x8x128xf32, #tpu.memory_space<vmem>>, %arg9: memref<32x32xf32, #tpu.memory_space<vmem>>, %arg10: memref<32x32xf32, #tpu.memory_space<vmem>>, %arg11: memref<1x32xf32, #tpu.memory_space<vmem>>, %arg12: memref<1x32xf32, #tpu.memory_space<vmem>>, %arg13: memref<1x32xf32, #tpu.memory_space<vmem>>, %arg14: memref<1x32xf32, #tpu.memory_space<vmem>>, %arg15: memref<1x32xf32, #tpu.memory_space<vmem>>, %arg16: memref<1x32xf32, #tpu.memory_space<vmem>>, %arg17: memref<1x32xf32, #tpu.memory_space<vmem>>) attributes {dimension_semantics = [#tpu.dimension_semantics<parallel>, #tpu.dimension_semantics<arbitrary>], iteration_bounds = array<i64: 1, 1>, scalar_prefetch = 2 : i64, scratch_operands = 9 : i64, tpu.core_type = #tpu.core_type<tc>, window_params = [{transform_indices = @transform_0, window_bounds = array<i64: 8, 32>}, {transform_indices = @transform_1, window_bounds = array<i64: 8, 32>}, {transform_indices = @transform_2, window_bounds = array<i64: 8, 32>}, {transform_indices = @transform_3, window_bounds = array<i64: 8, 32>}, {transform_indices = @transform_4, window_bounds = array<i64: 1, 8, 128>}]} {
    %c0_i32 = arith.constant 0 : i32
    %0 = arith.cmpi eq, %arg1, %c0_i32 : i32
    %1 = arith.extui %0 : i1 to i32
    %c0_i32_0 = arith.constant 0 : i32
    %2 = arith.cmpi ne, %1, %c0_i32_0 : i32
    scf.if %2 {
      %cst_54 = arith.constant 0.000000e+00 : f32
      %57 = vector.broadcast %cst_54 : f32 to vector<32x32xf32>
      %c0_55 = arith.constant 0 : index
      %c0_56 = arith.constant 0 : index
      %58 = vector.load %arg9[%c0_55, %c0_56] : memref<32x32xf32, #tpu.memory_space<vmem>>, vector<32x32xf32>
      tpu.vector_store %arg9[%c0_55, %c0_56], %57 {strides = array<i32>} : memref<32x32xf32, #tpu.memory_space<vmem>>, vector<32x32xf32>,
      %cst_57 = arith.constant 0.000000e+00 : f32
      %59 = vector.broadcast %cst_57 : f32 to vector<32x32xf32>
      %c0_58 = arith.constant 0 : index
      %c0_59 = arith.constant 0 : index
      %60 = vector.load %arg10[%c0_58, %c0_59] : memref<32x32xf32, #tpu.memory_space<vmem>>, vector<32x32xf32>
      tpu.vector_store %arg10[%c0_58, %c0_59], %59 {strides = array<i32>} : memref<32x32xf32, #tpu.memory_space<vmem>>, vector<32x32xf32>,
      %cst_60 = arith.constant 0.000000e+00 : f32
      %61 = vector.broadcast %cst_60 : f32 to vector<1x32xf32>
      %c0_61 = arith.constant 0 : index
      %c0_62 = arith.constant 0 : index
      %62 = vector.load %arg11[%c0_61, %c0_62] : memref<1x32xf32, #tpu.memory_space<vmem>>, vector<1x32xf32>
      tpu.vector_store %arg11[%c0_61, %c0_62], %61 {strides = array<i32>} : memref<1x32xf32, #tpu.memory_space<vmem>>, vector<1x32xf32>,
      %cst_63 = arith.constant 0.000000e+00 : f32
      %63 = vector.broadcast %cst_63 : f32 to vector<1x32xf32>
      %c0_64 = arith.constant 0 : index
      %c0_65 = arith.constant 0 : index
      %64 = vector.load %arg12[%c0_64, %c0_65] : memref<1x32xf32, #tpu.memory_space<vmem>>, vector<1x32xf32>
      tpu.vector_store %arg12[%c0_64, %c0_65], %63 {strides = array<i32>} : memref<1x32xf32, #tpu.memory_space<vmem>>, vector<1x32xf32>,
      %cst_66 = arith.constant 0.000000e+00 : f32
      %65 = vector.broadcast %cst_66 : f32 to vector<1x32xf32>
      %c0_67 = arith.constant 0 : index
      %c0_68 = arith.constant 0 : index
      %66 = vector.load %arg13[%c0_67, %c0_68] : memref<1x32xf32, #tpu.memory_space<vmem>>, vector<1x32xf32>
      tpu.vector_store %arg13[%c0_67, %c0_68], %65 {strides = array<i32>} : memref<1x32xf32, #tpu.memory_space<vmem>>, vector<1x32xf32>,
      %cst_69 = arith.constant 0.000000e+00 : f32
      %67 = vector.broadcast %cst_69 : f32 to vector<1x32xf32>
      %c0_70 = arith.constant 0 : index
      %c0_71 = arith.constant 0 : index
      %68 = vector.load %arg14[%c0_70, %c0_71] : memref<1x32xf32, #tpu.memory_space<vmem>>, vector<1x32xf32>
      tpu.vector_store %arg14[%c0_70, %c0_71], %67 {strides = array<i32>} : memref<1x32xf32, #tpu.memory_space<vmem>>, vector<1x32xf32>,
      %cst_72 = arith.constant 0.000000e+00 : f32
      %69 = vector.broadcast %cst_72 : f32 to vector<1x32xf32>
      %c0_73 = arith.constant 0 : index
      %c0_74 = arith.constant 0 : index
      %70 = vector.load %arg15[%c0_73, %c0_74] : memref<1x32xf32, #tpu.memory_space<vmem>>, vector<1x32xf32>
      tpu.vector_store %arg15[%c0_73, %c0_74], %69 {strides = array<i32>} : memref<1x32xf32, #tpu.memory_space<vmem>>, vector<1x32xf32>,
      %cst_75 = arith.constant 0.000000e+00 : f32
      %71 = vector.broadcast %cst_75 : f32 to vector<1x32xf32>
      %c0_76 = arith.constant 0 : index
      %c0_77 = arith.constant 0 : index
      %72 = vector.load %arg16[%c0_76, %c0_77] : memref<1x32xf32, #tpu.memory_space<vmem>>, vector<1x32xf32>
      tpu.vector_store %arg16[%c0_76, %c0_77], %71 {strides = array<i32>} : memref<1x32xf32, #tpu.memory_space<vmem>>, vector<1x32xf32>,
      %cst_78 = arith.constant 0.000000e+00 : f32
      %73 = vector.broadcast %cst_78 : f32 to vector<1x32xf32>
      %c0_79 = arith.constant 0 : index
      %c0_80 = arith.constant 0 : index
      %74 = vector.load %arg17[%c0_79, %c0_80] : memref<1x32xf32, #tpu.memory_space<vmem>>, vector<1x32xf32>
      tpu.vector_store %arg17[%c0_79, %c0_80], %73 {strides = array<i32>} : memref<1x32xf32, #tpu.memory_space<vmem>>, vector<1x32xf32>,
    } else {
    }
    %c0 = arith.constant 0 : index
    %c0_1 = arith.constant 0 : index
    %3 = vector.load %arg4[%c0, %c0_1] : memref<8x32xf32, #tpu.memory_space<vmem>>, vector<8x32xf32>
    %c0_2 = arith.constant 0 : index
    %c0_3 = arith.constant 0 : index
    %4 = vector.load %arg5[%c0_2, %c0_3] : memref<8x32xf32, #tpu.memory_space<vmem>>, vector<8x32xf32>
    %c0_4 = arith.constant 0 : index
    %c0_5 = arith.constant 0 : index
    %5 = vector.load %arg6[%c0_4, %c0_5] : memref<8x32xf32, #tpu.memory_space<vmem>>, vector<8x32xf32>
    %c0_6 = arith.constant 0 : index
    %c0_7 = arith.constant 0 : index
    %6 = vector.load %arg7[%c0_6, %c0_7] : memref<8x32xf32, #tpu.memory_space<vmem>>, vector<8x32xf32>
    %c0_8 = arith.constant 0 : index
    %c0_9 = arith.constant 0 : index
    %7 = vector.load %arg9[%c0_8, %c0_9] : memref<32x32xf32, #tpu.memory_space<vmem>>, vector<32x32xf32>
    %cst = arith.constant dense<0.000000e+00> : vector<32x32xf32>
    %8 = tpu.matmul %3, %4, %cst {dimension_numbers = #tpu.dot_dimension_numbers<[0], [0], [1], [1], [0, 1, 1, 1], [], []>} : vector<8x32xf32>, vector<8x32xf32>, vector<32x32xf32> -> vector<32x32xf32>
    %9 = arith.addf %7, %8 : vector<32x32xf32>
    %c0_10 = arith.constant 0 : index
    %c0_11 = arith.constant 0 : index
    %10 = vector.load %arg9[%c0_10, %c0_11] : memref<32x32xf32, #tpu.memory_space<vmem>>, vector<32x32xf32>
    tpu.vector_store %arg9[%c0_10, %c0_11], %9 {strides = array<i32>} : memref<32x32xf32, #tpu.memory_space<vmem>>, vector<32x32xf32>,
    %c0_12 = arith.constant 0 : index
    %c0_13 = arith.constant 0 : index
    %11 = vector.load %arg10[%c0_12, %c0_13] : memref<32x32xf32, #tpu.memory_space<vmem>>, vector<32x32xf32>
    %cst_14 = arith.constant dense<0.000000e+00> : vector<32x32xf32>
    %12 = tpu.matmul %5, %6, %cst_14 {dimension_numbers = #tpu.dot_dimension_numbers<[0], [0], [1], [1], [0, 1, 1, 1], [], []>} : vector<8x32xf32>, vector<8x32xf32>, vector<32x32xf32> -> vector<32x32xf32>
    %13 = arith.addf %11, %12 : vector<32x32xf32>
    %c0_15 = arith.constant 0 : index
    %c0_16 = arith.constant 0 : index
    %14 = vector.load %arg10[%c0_15, %c0_16] : memref<32x32xf32, #tpu.memory_space<vmem>>, vector<32x32xf32>
    tpu.vector_store %arg10[%c0_15, %c0_16], %13 {strides = array<i32>} : memref<32x32xf32, #tpu.memory_space<vmem>>, vector<32x32xf32>,
    %c0_17 = arith.constant 0 : index
    %c0_18 = arith.constant 0 : index
    %15 = vector.load %arg11[%c0_17, %c0_18] : memref<1x32xf32, #tpu.memory_space<vmem>>, vector<1x32xf32>
    %cst_19 = arith.constant dense<0.000000e+00> : vector<32xf32>
    %16 = vector.multi_reduction <add>, %3, %cst_19 [0] : vector<8x32xf32> to vector<32xf32>
    %17 = vector.shape_cast %16 : vector<32xf32> to vector<1x32xf32>
    %18 = arith.addf %15, %17 : vector<1x32xf32>
    %c0_20 = arith.constant 0 : index
    %c0_21 = arith.constant 0 : index
    %19 = vector.load %arg11[%c0_20, %c0_21] : memref<1x32xf32, #tpu.memory_space<vmem>>, vector<1x32xf32>
    tpu.vector_store %arg11[%c0_20, %c0_21], %18 {strides = array<i32>} : memref<1x32xf32, #tpu.memory_space<vmem>>, vector<1x32xf32>,
    %c0_22 = arith.constant 0 : index
    %c0_23 = arith.constant 0 : index
    %20 = vector.load %arg12[%c0_22, %c0_23] : memref<1x32xf32, #tpu.memory_space<vmem>>, vector<1x32xf32>
    %cst_24 = arith.constant dense<0.000000e+00> : vector<32xf32>
    %21 = vector.multi_reduction <add>, %4, %cst_24 [0] : vector<8x32xf32> to vector<32xf32>
    %22 = vector.shape_cast %21 : vector<32xf32> to vector<1x32xf32>
    %23 = arith.addf %20, %22 : vector<1x32xf32>
    %c0_25 = arith.constant 0 : index
    %c0_26 = arith.constant 0 : index
    %24 = vector.load %arg12[%c0_25, %c0_26] : memref<1x32xf32, #tpu.memory_space<vmem>>, vector<1x32xf32>
    tpu.vector_store %arg12[%c0_25, %c0_26], %23 {strides = array<i32>} : memref<1x32xf32, #tpu.memory_space<vmem>>, vector<1x32xf32>,
    %c0_27 = arith.constant 0 : index
    %c0_28 = arith.constant 0 : index
    %25 = vector.load %arg13[%c0_27, %c0_28] : memref<1x32xf32, #tpu.memory_space<vmem>>, vector<1x32xf32>
    %cst_29 = arith.constant dense<0.000000e+00> : vector<32xf32>
    %26 = vector.multi_reduction <add>, %5, %cst_29 [0] : vector<8x32xf32> to vector<32xf32>
    %27 = vector.shape_cast %26 : vector<32xf32> to vector<1x32xf32>
    %28 = arith.addf %25, %27 : vector<1x32xf32>
    %c0_30 = arith.constant 0 : index
    %c0_31 = arith.constant 0 : index
    %29 = vector.load %arg13[%c0_30, %c0_31] : memref<1x32xf32, #tpu.memory_space<vmem>>, vector<1x32xf32>
    tpu.vector_store %arg13[%c0_30, %c0_31], %28 {strides = array<i32>} : memref<1x32xf32, #tpu.memory_space<vmem>>, vector<1x32xf32>,
    %c0_32 = arith.constant 0 : index
    %c0_33 = arith.constant 0 : index
    %30 = vector.load %arg14[%c0_32, %c0_33] : memref<1x32xf32, #tpu.memory_space<vmem>>, vector<1x32xf32>
    %cst_34 = arith.constant dense<0.000000e+00> : vector<32xf32>
    %31 = vector.multi_reduction <add>, %6, %cst_34 [0] : vector<8x32xf32> to vector<32xf32>
    %32 = vector.shape_cast %31 : vector<32xf32> to vector<1x32xf32>
    %33 = arith.addf %30, %32 : vector<1x32xf32>
    %c0_35 = arith.constant 0 : index
    %c0_36 = arith.constant 0 : index
    %34 = vector.load %arg14[%c0_35, %c0_36] : memref<1x32xf32, #tpu.memory_space<vmem>>, vector<1x32xf32>
    tpu.vector_store %arg14[%c0_35, %c0_36], %33 {strides = array<i32>} : memref<1x32xf32, #tpu.memory_space<vmem>>, vector<1x32xf32>,
    %c0_37 = arith.constant 0 : index
    %c0_38 = arith.constant 0 : index
    %35 = vector.load %arg15[%c0_37, %c0_38] : memref<1x32xf32, #tpu.memory_space<vmem>>, vector<1x32xf32>
    %36 = arith.mulf %3, %3 : vector<8x32xf32>
    %cst_39 = arith.constant dense<0.000000e+00> : vector<32xf32>
    %37 = vector.multi_reduction <add>, %36, %cst_39 [0] : vector<8x32xf32> to vector<32xf32>
    %38 = vector.shape_cast %37 : vector<32xf32> to vector<1x32xf32>
    %39 = arith.addf %35, %38 : vector<1x32xf32>
    %c0_40 = arith.constant 0 : index
    %c0_41 = arith.constant 0 : index
    %40 = vector.load %arg15[%c0_40, %c0_41] : memref<1x32xf32, #tpu.memory_space<vmem>>, vector<1x32xf32>
    tpu.vector_store %arg15[%c0_40, %c0_41], %39 {strides = array<i32>} : memref<1x32xf32, #tpu.memory_space<vmem>>, vector<1x32xf32>,
    %c0_42 = arith.constant 0 : index
    %c0_43 = arith.constant 0 : index
    %41 = vector.load %arg16[%c0_42, %c0_43] : memref<1x32xf32, #tpu.memory_space<vmem>>, vector<1x32xf32>
    %42 = arith.mulf %5, %5 : vector<8x32xf32>
    %cst_44 = arith.constant dense<0.000000e+00> : vector<32xf32>
    %43 = vector.multi_reduction <add>, %42, %cst_44 [0] : vector<8x32xf32> to vector<32xf32>
    %44 = vector.shape_cast %43 : vector<32xf32> to vector<1x32xf32>
    %45 = arith.addf %41, %44 : vector<1x32xf32>
    %c0_45 = arith.constant 0 : index
    %c0_46 = arith.constant 0 : index
    %46 = vector.load %arg16[%c0_45, %c0_46] : memref<1x32xf32, #tpu.memory_space<vmem>>, vector<1x32xf32>
    tpu.vector_store %arg16[%c0_45, %c0_46], %45 {strides = array<i32>} : memref<1x32xf32, #tpu.memory_space<vmem>>, vector<1x32xf32>,
    %47 = arith.subf %3, %5 : vector<8x32xf32>
    %c0_47 = arith.constant 0 : index
    %c0_48 = arith.constant 0 : index
    %48 = vector.load %arg17[%c0_47, %c0_48] : memref<1x32xf32, #tpu.memory_space<vmem>>, vector<1x32xf32>
    %49 = arith.mulf %47, %47 : vector<8x32xf32>
    %cst_49 = arith.constant dense<0.000000e+00> : vector<32xf32>
    %50 = vector.multi_reduction <add>, %49, %cst_49 [0] : vector<8x32xf32> to vector<32xf32>
    %51 = vector.shape_cast %50 : vector<32xf32> to vector<1x32xf32>
    %52 = arith.addf %48, %51 : vector<1x32xf32>
    %c0_50 = arith.constant 0 : index
    %c0_51 = arith.constant 0 : index
    %53 = vector.load %arg17[%c0_50, %c0_51] : memref<1x32xf32, #tpu.memory_space<vmem>>, vector<1x32xf32>
    tpu.vector_store %arg17[%c0_50, %c0_51], %52 {strides = array<i32>} : memref<1x32xf32, #tpu.memory_space<vmem>>, vector<1x32xf32>,
    %c0_i32_52 = arith.constant 0 : i32
    %54 = arith.cmpi eq, %arg1, %c0_i32_52 : i32
    %55 = arith.extui %54 : i1 to i32
    %c0_i32_53 = arith.constant 0 : i32
    %56 = arith.cmpi ne, %55, %c0_i32_53 : i32
    scf.if %56 {
      %57 = arith.index_cast %arg0 : i32 to index
      %58 = memref.load %arg2[%57] : memref<1xi32, #tpu.memory_space<smem>>
      %59 = arith.index_cast %arg0 : i32 to index
      %60 = memref.load %arg3[%59] : memref<1xi32, #tpu.memory_space<smem>>
      %61 = arith.cmpi eq, %58, %60 : i32
      %62 = arith.extui %61 : i1 to i32
      %63 = arith.sitofp %62 : i32 to f32
      %c0_54 = arith.constant 0 : index
      %c0_55 = arith.constant 0 : index
      %64 = vector.load %arg11[%c0_54, %c0_55] : memref<1x32xf32, #tpu.memory_space<vmem>>, vector<1x32xf32>
      %c0_56 = arith.constant 0 : index
      %c0_57 = arith.constant 0 : index
      %65 = vector.load %arg12[%c0_56, %c0_57] : memref<1x32xf32, #tpu.memory_space<vmem>>, vector<1x32xf32>
      %cst_58 = arith.constant dense<0.000000e+00> : vector<32x32xf32>
      %66 = tpu.matmul %64, %65, %cst_58 {dimension_numbers = #tpu.dot_dimension_numbers<[0], [0], [1], [1], [0, 1, 1, 1], [], []>} : vector<1x32xf32>, vector<1x32xf32>, vector<32x32xf32> -> vector<32x32xf32>
      %c0_59 = arith.constant 0 : index
      %c0_60 = arith.constant 0 : index
      %67 = vector.load %arg13[%c0_59, %c0_60] : memref<1x32xf32, #tpu.memory_space<vmem>>, vector<1x32xf32>
      %c0_61 = arith.constant 0 : index
      %c0_62 = arith.constant 0 : index
      %68 = vector.load %arg14[%c0_61, %c0_62] : memref<1x32xf32, #tpu.memory_space<vmem>>, vector<1x32xf32>
      %cst_63 = arith.constant dense<0.000000e+00> : vector<32x32xf32>
      %69 = tpu.matmul %67, %68, %cst_63 {dimension_numbers = #tpu.dot_dimension_numbers<[0], [0], [1], [1], [0, 1, 1, 1], [], []>} : vector<1x32xf32>, vector<1x32xf32>, vector<32x32xf32> -> vector<32x32xf32>
      %c0_64 = arith.constant 0 : index
      %c0_65 = arith.constant 0 : index
      %70 = vector.load %arg9[%c0_64, %c0_65] : memref<32x32xf32, #tpu.memory_space<vmem>>, vector<32x32xf32>
      %cst_66 = arith.constant 1.250000e-01 : f32
      %71 = vector.broadcast %cst_66 : f32 to vector<32x32xf32>
      %72 = arith.mulf %66, %71 : vector<32x32xf32>
      %73 = arith.subf %70, %72 : vector<32x32xf32>
      %cst_67 = arith.constant 0.142857149 : f32
      %74 = vector.broadcast %cst_67 : f32 to vector<32x32xf32>
      %75 = arith.mulf %73, %74 : vector<32x32xf32>
      %c0_68 = arith.constant 0 : index
      %c0_69 = arith.constant 0 : index
      %76 = vector.load %arg10[%c0_68, %c0_69] : memref<32x32xf32, #tpu.memory_space<vmem>>, vector<32x32xf32>
      %cst_70 = arith.constant 1.250000e-01 : f32
      %77 = vector.broadcast %cst_70 : f32 to vector<32x32xf32>
      %78 = arith.mulf %69, %77 : vector<32x32xf32>
      %79 = arith.subf %76, %78 : vector<32x32xf32>
      %cst_71 = arith.constant 0.142857149 : f32
      %80 = vector.broadcast %cst_71 : f32 to vector<32x32xf32>
      %81 = arith.mulf %79, %80 : vector<32x32xf32>
      %82 = arith.mulf %75, %75 : vector<32x32xf32>
      %83 = vector.shape_cast %82 : vector<32x32xf32> to vector<1x32x32xf32>
      %cst_72 = arith.constant dense<0.000000e+00> : vector<1xf32>
      %84 = vector.multi_reduction <add>, %83, %cst_72 [1, 2] : vector<1x32x32xf32> to vector<1xf32>
      %85 = vector.shape_cast %84 : vector<1xf32> to vector<1x1x1xf32>
      %86 = vector.extract %85[0, 0, 0] : f32 from vector<1x1x1xf32>
      %87 = arith.mulf %81, %81 : vector<32x32xf32>
      %88 = vector.shape_cast %87 : vector<32x32xf32> to vector<1x32x32xf32>
      %cst_73 = arith.constant dense<0.000000e+00> : vector<1xf32>
      %89 = vector.multi_reduction <add>, %88, %cst_73 [1, 2] : vector<1x32x32xf32> to vector<1xf32>
      %90 = vector.shape_cast %89 : vector<1xf32> to vector<1x1x1xf32>
      %91 = vector.extract %90[0, 0, 0] : f32 from vector<1x1x1xf32>
      %92 = arith.addf %86, %91 : f32
      %cst_74 = arith.constant 2.000000e+00 : f32
      %93 = arith.subf %cst_74, %63 : f32
      %94 = arith.mulf %93, %92 : f32
      %c0_75 = arith.constant 0 : index
      %c0_76 = arith.constant 0 : index
      %95 = vector.load %arg15[%c0_75, %c0_76] : memref<1x32xf32, #tpu.memory_space<vmem>>, vector<1x32xf32>
      %c0_77 = arith.constant 0 : index
      %c0_78 = arith.constant 0 : index
      %96 = vector.load %arg11[%c0_77, %c0_78] : memref<1x32xf32, #tpu.memory_space<vmem>>, vector<1x32xf32>
      %c0_79 = arith.constant 0 : index
      %c0_80 = arith.constant 0 : index
      %97 = vector.load %arg11[%c0_79, %c0_80] : memref<1x32xf32, #tpu.memory_space<vmem>>, vector<1x32xf32>
      %98 = arith.mulf %96, %97 : vector<1x32xf32>
      %cst_81 = arith.constant 1.250000e-01 : f32
      %99 = vector.broadcast %cst_81 : f32 to vector<1x32xf32>
      %100 = arith.mulf %98, %99 : vector<1x32xf32>
      %101 = arith.subf %95, %100 : vector<1x32xf32>
      %cst_82 = arith.constant 0.142857149 : f32
      %102 = vector.broadcast %cst_82 : f32 to vector<1x32xf32>
      %103 = arith.mulf %101, %102 : vector<1x32xf32>
      %c0_83 = arith.constant 0 : index
      %c0_84 = arith.constant 0 : index
      %104 = vector.load %arg16[%c0_83, %c0_84] : memref<1x32xf32, #tpu.memory_space<vmem>>, vector<1x32xf32>
      %c0_85 = arith.constant 0 : index
      %c0_86 = arith.constant 0 : index
      %105 = vector.load %arg13[%c0_85, %c0_86] : memref<1x32xf32, #tpu.memory_space<vmem>>, vector<1x32xf32>
      %c0_87 = arith.constant 0 : index
      %c0_88 = arith.constant 0 : index
      %106 = vector.load %arg13[%c0_87, %c0_88] : memref<1x32xf32, #tpu.memory_space<vmem>>, vector<1x32xf32>
      %107 = arith.mulf %105, %106 : vector<1x32xf32>
      %cst_89 = arith.constant 1.250000e-01 : f32
      %108 = vector.broadcast %cst_89 : f32 to vector<1x32xf32>
      %109 = arith.mulf %107, %108 : vector<1x32xf32>
      %110 = arith.subf %104, %109 : vector<1x32xf32>
      %cst_90 = arith.constant 0.142857149 : f32
      %111 = vector.broadcast %cst_90 : f32 to vector<1x32xf32>
      %112 = arith.mulf %110, %111 : vector<1x32xf32>
      %113 = arith.mulf %103, %103 : vector<1x32xf32>
      %114 = vector.shape_cast %113 : vector<1x32xf32> to vector<1x1x32xf32>
      %cst_91 = arith.constant dense<0.000000e+00> : vector<1xf32>
      %115 = vector.multi_reduction <add>, %114, %cst_91 [1, 2] : vector<1x1x32xf32> to vector<1xf32>
      %116 = vector.shape_cast %115 : vector<1xf32> to vector<1x1x1xf32>
      %117 = vector.extract %116[0, 0, 0] : f32 from vector<1x1x1xf32>
      %118 = arith.mulf %112, %112 : vector<1x32xf32>
      %119 = vector.shape_cast %118 : vector<1x32xf32> to vector<1x1x32xf32>
      %cst_92 = arith.constant dense<0.000000e+00> : vector<1xf32>
      %120 = vector.multi_reduction <add>, %119, %cst_92 [1, 2] : vector<1x1x32xf32> to vector<1xf32>
      %121 = vector.shape_cast %120 : vector<1xf32> to vector<1x1x1xf32>
      %122 = vector.extract %121[0, 0, 0] : f32 from vector<1x1x1xf32>
      %123 = arith.addf %117, %122 : f32
      %124 = arith.mulf %63, %123 : f32
      %cst_93 = arith.constant 0.00999999977 : f32
      %125 = vector.broadcast %cst_93 : f32 to vector<1x32xf32>
      %126 = arith.addf %103, %125 : vector<1x32xf32>
      %127 = math.sqrt %126 : vector<1x32xf32>
      %cst_94 = arith.constant 0.00999999977 : f32
      %128 = vector.broadcast %cst_94 : f32 to vector<1x32xf32>
      %129 = arith.addf %112, %128 : vector<1x32xf32>
      %130 = math.sqrt %129 : vector<1x32xf32>
      %cst_95 = arith.constant 1.000000e+00 : f32
      %131 = vector.broadcast %cst_95 : f32 to vector<1x32xf32>
      %132 = arith.subf %131, %127 : vector<1x32xf32>
      %cst_96 = arith.constant 0.000000e+00 : f32
      %133 = vector.broadcast %cst_96 : f32 to vector<1x32xf32>
      %134 = arith.maximumf %132, %133 : vector<1x32xf32>
      %135 = vector.shape_cast %134 : vector<1x32xf32> to vector<1x1x32xf32>
      %cst_97 = arith.constant dense<0.000000e+00> : vector<1xf32>
      %136 = vector.multi_reduction <add>, %135, %cst_97 [1, 2] : vector<1x1x32xf32> to vector<1xf32>
      %137 = vector.shape_cast %136 : vector<1xf32> to vector<1x1x1xf32>
      %138 = vector.extract %137[0, 0, 0] : f32 from vector<1x1x1xf32>
      %cst_98 = arith.constant 1.000000e+00 : f32
      %139 = vector.broadcast %cst_98 : f32 to vector<1x32xf32>
      %140 = arith.subf %139, %130 : vector<1x32xf32>
      %cst_99 = arith.constant 0.000000e+00 : f32
      %141 = vector.broadcast %cst_99 : f32 to vector<1x32xf32>
      %142 = arith.maximumf %140, %141 : vector<1x32xf32>
      %143 = vector.shape_cast %142 : vector<1x32xf32> to vector<1x1x32xf32>
      %cst_100 = arith.constant dense<0.000000e+00> : vector<1xf32>
      %144 = vector.multi_reduction <add>, %143, %cst_100 [1, 2] : vector<1x1x32xf32> to vector<1xf32>
      %145 = vector.shape_cast %144 : vector<1xf32> to vector<1x1x1xf32>
      %146 = vector.extract %145[0, 0, 0] : f32 from vector<1x1x1xf32>
      %147 = arith.addf %138, %146 : f32
      %148 = arith.mulf %63, %147 : f32
      %c0_101 = arith.constant 0 : index
      %c0_102 = arith.constant 0 : index
      %149 = vector.load %arg17[%c0_101, %c0_102] : memref<1x32xf32, #tpu.memory_space<vmem>>, vector<1x32xf32>
      %150 = vector.shape_cast %149 : vector<1x32xf32> to vector<1x1x32xf32>
      %cst_103 = arith.constant dense<0.000000e+00> : vector<1xf32>
      %151 = vector.multi_reduction <add>, %150, %cst_103 [1, 2] : vector<1x1x32xf32> to vector<1xf32>
      %152 = vector.shape_cast %151 : vector<1xf32> to vector<1x1x1xf32>
      %153 = vector.extract %152[0, 0, 0] : f32 from vector<1x1x1xf32>
      %154 = arith.mulf %63, %153 : f32
      %155 = tpu.iota {dimensions = array<i32: 0>} : vector<8x128xi32>
      %156 = tpu.iota {dimensions = array<i32: 1>} : vector<8x128xi32>
      %c0_i32_104 = arith.constant 0 : i32
      %157 = vector.broadcast %c0_i32_104 : i32 to vector<8x128xi32>
      %158 = arith.cmpi eq, %156, %157 : vector<8x128xi32>
      %c0_i32_105 = arith.constant 0 : i32
      %159 = vector.broadcast %c0_i32_105 : i32 to vector<8x128xi32>
      %160 = arith.cmpi eq, %155, %159 : vector<8x128xi32>
      %161 = arith.andi %160, %158 : vector<8x128xi1>
      %c1_i32 = arith.constant 1 : i32
      %162 = vector.broadcast %c1_i32 : i32 to vector<8x128xi32>
      %163 = arith.cmpi eq, %155, %162 : vector<8x128xi32>
      %164 = arith.andi %163, %158 : vector<8x128xi1>
      %c2_i32 = arith.constant 2 : i32
      %165 = vector.broadcast %c2_i32 : i32 to vector<8x128xi32>
      %166 = arith.cmpi eq, %155, %165 : vector<8x128xi32>
      %167 = arith.andi %166, %158 : vector<8x128xi1>
      %c3_i32 = arith.constant 3 : i32
      %168 = vector.broadcast %c3_i32 : i32 to vector<8x128xi32>
      %169 = arith.cmpi eq, %155, %168 : vector<8x128xi32>
      %170 = arith.andi %169, %158 : vector<8x128xi1>
      %cst_106 = arith.constant 0.000000e+00 : f32
      %171 = vector.broadcast %124 : f32 to vector<8x128xf32>
      %172 = vector.broadcast %cst_106 : f32 to vector<8x128xf32>
      %173 = arith.select %170, %171, %172 : vector<8x128xi1>, vector<8x128xf32>
      %174 = vector.broadcast %94 : f32 to vector<8x128xf32>
      %175 = arith.select %167, %174, %173 : vector<8x128xi1>, vector<8x128xf32>
      %176 = vector.broadcast %148 : f32 to vector<8x128xf32>
      %177 = arith.select %164, %176, %175 : vector<8x128xi1>, vector<8x128xf32>
      %178 = vector.broadcast %154 : f32 to vector<8x128xf32>
      %179 = arith.select %161, %178, %177 : vector<8x128xi1>, vector<8x128xf32>
      %180 = vector.shape_cast %179 : vector<8x128xf32> to vector<1x8x128xf32>
      %c0_107 = arith.constant 0 : index
      %c0_108 = arith.constant 0 : index
      %c0_109 = arith.constant 0 : index
      %181 = vector.load %arg8[%c0_107, %c0_108, %c0_109] : memref<1x8x128xf32, #tpu.memory_space<vmem>>, vector<1x8x128xf32>
      tpu.vector_store %arg8[%c0_107, %c0_108, %c0_109], %180 {strides = array<i32>} : memref<1x8x128xf32, #tpu.memory_space<vmem>>, vector<1x8x128xf32>,
    } else {
    }
    return
  }
  func.func @transform_0(%arg0: i32, %arg1: i32, %arg2: memref<1xi32, #tpu.memory_space<smem>>, %arg3: memref<1xi32, #tpu.memory_space<smem>>) -> (i32, i32) {
    %0 = arith.index_cast %arg0 : i32 to index
    %1 = memref.load %arg2[%0] : memref<1xi32, #tpu.memory_space<smem>>
    %c0_i32 = arith.constant 0 : i32
    return %arg1, %1 : i32, i32
  }
  func.func @transform_1(%arg0: i32, %arg1: i32, %arg2: memref<1xi32, #tpu.memory_space<smem>>, %arg3: memref<1xi32, #tpu.memory_space<smem>>) -> (i32, i32) {
    %0 = arith.index_cast %arg0 : i32 to index
    %1 = memref.load %arg3[%0] : memref<1xi32, #tpu.memory_space<smem>>
    %c0_i32 = arith.constant 0 : i32
    return %arg1, %1 : i32, i32
  }
  func.func @transform_2(%arg0: i32, %arg1: i32, %arg2: memref<1xi32, #tpu.memory_space<smem>>, %arg3: memref<1xi32, #tpu.memory_space<smem>>) -> (i32, i32) {
    %0 = arith.index_cast %arg0 : i32 to index
    %1 = memref.load %arg2[%0] : memref<1xi32, #tpu.memory_space<smem>>
    %c0_i32 = arith.constant 0 : i32
    return %arg1, %1 : i32, i32
  }
  func.func @transform_3(%arg0: i32, %arg1: i32, %arg2: memref<1xi32, #tpu.memory_space<smem>>, %arg3: memref<1xi32, #tpu.memory_space<smem>>) -> (i32, i32) {
    %0 = arith.index_cast %arg0 : i32 to index
    %1 = memref.load %arg3[%0] : memref<1xi32, #tpu.memory_space<smem>>
    %c0_i32 = arith.constant 0 : i32
    return %arg1, %1 : i32, i32
  }
  func.func @transform_4(%arg0: i32, %arg1: i32, %arg2: memref<1xi32, #tpu.memory_space<smem>>, %arg3: memref<1xi32, #tpu.memory_space<smem>>) -> (i32, i32, i32) {
    %c0_i32 = arith.constant 0 : i32
    %c0_i32_0 = arith.constant 0 : i32
    %c0_i32_1 = arith.constant 0 : i32
    return %arg0, %c0_i32, %c0_i32_0 : i32, i32, i32
  }
}

</mosaic_0001>

<bundles_post_ra>
// kernel: tpu_custom_call.1
= control target key start
LH: loop header
LB: loop body
LE: loop exit
PB: predicated region body
PF: predicated region fallthrough
CT: control target
= control target key end

     0   :  { %13 = vsyncpa [#allocation15], 0  ;;  %s1324_s0 = inlined_call_operand.<no memory space> [shape: s32[1], index: 0, kind: input, shape index: {}]   ;;  %s1325_s1 = inlined_call_operand.<no memory space> [shape: s32[1], index: 1, kind: input, shape index: {}]   ;;  %s1326_s2 = inlined_call_operand.hbm [shape: f32[8,32], index: 2, kind: input, shape index: {}]   ;;  %s1327_s3 = inlined_call_operand.vmem [shape: f32[8,32], index: 3, kind: input, shape index: {}]   ;;  %s1328_s4 = inlined_call_operand.hbm [shape: f32[8,32], index: 4, kind: input, shape index: {}]   ;;  %s1329_s5 = inlined_call_operand.vmem [shape: f32[8,32], index: 5, kind: input, shape index: {}]   ;;  %s1330_s6 = inlined_call_operand.hbm [shape: f32[1,8,128], index: 6, kind: output, shape index: {}]  }
   0x1   :  { %14 = vsyncpa [#allocation18], 0 }
   0x2   :  { %15 = vsyncpa [#allocation16], 0  ;;  %s967_s23 = sshll.u32 %s1324_s0, 7  ;;  %s1139_s27 = smov [#allocation14]  }
   0x3   :  { %s23_s26 = scalar_lea.hbm %s1326_s2, %s967_s23  ;;  %s25_s28 = sshll.u32 %s1139_s27, 4  ;;  %s26_s28 = int_to_ptr.vmem [resolvable:$true] %s25_s28 }
   0x4   :  { %s1063_s29 = scalar_lea.hbm %s23_s26, 128  ;;  %s1065_s8 = scalar_lea.hbm %s1326_s2, 128 }
   0x5   :  { %p1064_p0 = scmp.ne.s32.totalorder %s23_s26, %s1063_s29  ;;  %p1066_p1 = scmp.lt.u32.totalorder %s23_s26, %s1326_s2 }
   0x6   :  { %p1067_p2 = scmp.lt.u32.totalorder %s1065_s8, %s1063_s29  ;;  %p1069_p4 = scmp.lt.u32.totalorder %s1063_s29, %s23_s26 }
   0x8   :  { %p1068_p3 = por %p1067_p2, %p1066_p1 }
   0xa   :  { %p1070_p5 = por %p1069_p4, %p1068_p3 }
   0xc   :  { %p1071_p6 = pnand %p1070_p5, %p1064_p0 }
   0xe   :  { %1074 = shalt.err (!%p1071_p6)
}
   0xf   :  { %s1075_s11 = scalar_lea.vmem %s26_s28, 128  ;;  %p1080_p8 = scmp.lt.s32.totalorder %s26_s28, %s26_s28 }
  0x10   :  { %p1076_p7 = scmp.ne.s32.totalorder %s26_s28, %s1075_s11  ;;  %p1081_p9 = scmp.lt.s32.totalorder %s1075_s11, %s1075_s11 }
  0x12   :  { %p1082_p10 = por %p1081_p9, %p1080_p8 }
  0x14   :  { %p1083_p11 = pnand %p1082_p10, %p1076_p7 }
  0x16   :  { %1086 = shalt.err (!%p1083_p11)
}
  0x17   :  { %28 = dma.hbm_to_vmem [thread:$0]  %s23_s26, 128, %s26_s28, [#allocation15]  }
  0x18   :  { %s44_s14 = scalar_lea.hbm %s1328_s4, %s967_s23  ;;  %s1140_s15 = smov [#allocation17]  }
  0x19   :  { %s46_s2 = sshll.u32 %s1140_s15, 4  ;;  %s1087_s16 = scalar_lea.hbm %s44_s14, 128  ;;  %s47_s2 = int_to_ptr.vmem [resolvable:$true] %s46_s2 }
  0x1a   :  { %p1088_p12 = scmp.ne.s32.totalorder %s44_s14, %s1087_s16  ;;  %s1089_s19 = scalar_lea.hbm %s1328_s4, 128 }
  0x1b   :  { %p1090_p13 = scmp.lt.u32.totalorder %s44_s14, %s1328_s4  ;;  %p1091_p0 = scmp.lt.u32.totalorder %s1089_s19, %s1087_s16 }
  0x1c   :  { %p1093_p2 = scmp.lt.u32.totalorder %s1087_s16, %s44_s14 }
  0x1d   :  { %p1092_p1 = por %p1091_p0, %p1090_p13 }
  0x1f   :  { %p1094_p3 = por %p1093_p2, %p1092_p1 }
  0x21   :  { %p1095_p4 = pnand %p1094_p3, %p1088_p12 }
  0x23   :  { %1098 = shalt.err (!%p1095_p4)
}
  0x24   :  { %s1099_s22 = scalar_lea.vmem %s47_s2, 128  ;;  %p1104_p6 = scmp.lt.s32.totalorder %s47_s2, %s47_s2 }
  0x25   :  { %p1100_p5 = scmp.ne.s32.totalorder %s47_s2, %s1099_s22  ;;  %p1105_p7 = scmp.lt.s32.totalorder %s1099_s22, %s1099_s22 }
  0x27   :  { %p1106_p8 = por %p1105_p7, %p1104_p6 }
  0x29   :  { %p1107_p9 = pnand %p1106_p8, %p1100_p5 }
  0x2b   :  { %1110 = shalt.err (!%p1107_p9)
}
  0x2c   :  { %49 = dma.hbm_to_vmem [thread:$0]  %s44_s14, 128, %s47_s2, [#allocation18]  }
  0x2d   :  { %1133 = dma.done.wait [#allocation15], 128  }
  0x2e   :  { %1134 = vsyncadd [#allocation15], 4294967168 }
  0x2f   :  { %1135 = dma.done.wait [#allocation18], 128  }
  0x30   :  { %1136 = vsyncadd [#allocation18], 4294967168  ;;  %vm92_vm0 = vcmask 261120   ;;  %vm101_vm1 = vcmask 253952   ;;  %v1141_v0 = vmov 0.0   ;;  %p76_p10 = scmp.lt.s32.totalorder %s1325_s1, 0  ;;  %p477_p11 = scmp.eq.s32.totalorder %s1324_s0, %s1325_s1 }
  0x31   :  { %102 = vst.msk [vmem:[#allocation4] sm:$0x1] %vm101_vm1, %v1141_v0  ;;  %106 = vst.msk [vmem:[#allocation8] sm:$0x1] %vm101_vm1, %v1141_v0  ;;  %v109_v1 = vld [vmem:[#allocation14] sm:$0xff]  ;;  %v111_v2 = vld [vmem:[#allocation17] sm:$0xff] }
  0x32   :  { %93 = vst.msk [vmem:[#allocation2] sm:$0xff] %vm92_vm0, %v1141_v0  ;;  %94 = vst.msk [vmem:[#allocation2 + $0x8] sm:$0xff] %vm92_vm0, %v1141_v0  ;;  %s1220_s26 = scalar_select %p76_p10, %s1325_s1, 0  ;;  %117 = vxpose.xlu0.b32.start.end [1/1] (short) (narrow) %v109_v1, 32  ;;  %v398_v3 = vsel %vm92_vm0, %v109_v1, 0.0  ;;  %v439_v4 = vmul.f32 %v109_v1, %v109_v1  ;;  %v450_v5 = vmul.f32 %v111_v2, %v111_v2  ;;  %v419_v8 = vsel %vm92_vm0, %v111_v2, 0.0 }
  0x33   :  { %95 = vst.msk [vmem:[#allocation2 + $0x10] sm:$0xff] %vm92_vm0, %v1141_v0  ;;  %96 = vst.msk [vmem:[#allocation2 + $0x18] sm:$0xff] %vm92_vm0, %v1141_v0  ;;  %v460_v6 = vsub.f32 %v109_v1, %v111_v2  ;;  %v399_v7 = vrot.slane %v398_v3, 4  ;;  %v420_v10 = vrot.slane %v419_v8, 4  ;;  %vm527_vm2 = vcmask 1040384   ;;  %s1142_s25 = smov [#allocation19]  }
  0x34   :  { %97 = vst.msk [vmem:[#allocation3] sm:$0xff] %vm92_vm0, %v1141_v0  ;;  %98 = vst.msk [vmem:[#allocation3 + $0x8] sm:$0xff] %vm92_vm0, %v1141_v0  ;;  %v440_v9 = vsel %vm92_vm0, %v439_v4, 0.0  ;;  %v451_v11 = vsel %vm92_vm0, %v450_v5, 0.0  ;;  %s969_s27 = sshll.u32 %s1220_s26, 3  ;;  %vm149_vm3 = vcmask 64512  }
  0x35   :  { %99 = vst.msk [vmem:[#allocation3 + $0x10] sm:$0xff] %vm92_vm0, %v1141_v0  ;;  %100 = vst.msk [vmem:[#allocation3 + $0x18] sm:$0xff] %vm92_vm0, %v1141_v0  ;;  %v462_v12 = vmul.f32 %v460_v6, %v460_v6  ;;  %v400_v13 = vadd.f32 %v399_v7, %v398_v3  ;;  %v441_v14 = vrot.slane %v440_v9, 4  ;;  %v452_v15 = vrot.slane %v451_v11, 4  ;;  %s79_s30 = scalar_lea.vmem %s1327_s3, %s969_s27  ;;  %s86_s8 = scalar_lea.vmem %s1329_s5, %s969_s27 }
  0x36   :  { %103 = vst.msk [vmem:[#allocation5] sm:$0x1] %vm101_vm1, %v1141_v0  ;;  %104 = vst.msk [vmem:[#allocation6] sm:$0x1] %vm101_vm1, %v1141_v0  ;;  %v421_v16 = vadd.f32 %v420_v10, %v419_v8  ;;  %v110_v18 = vld [vmem:[%s79_s30] sm:$0xff]  ;;  %vm514_vm4 = vcmask 7168  }
  0x37   :  { %105 = vst.msk [vmem:[#allocation7] sm:$0x1] %vm101_vm1, %v1141_v0  ;;  %107 = vst.msk [vmem:[#allocation9] sm:$0x1] %vm101_vm1, %v1141_v0  ;;  %v463_v17 = vsel %vm92_vm0, %v462_v12, 0.0  ;;  %v401_v19 = vrot.slane %v400_v13, 2  ;;  %v442_v20 = vadd.f32 %v441_v14, %v440_v9  ;;  %v453_v21 = vadd.f32 %v452_v15, %v451_v11  ;;  %1009 = vmatprep.subr.mxu0 %v110_v18 }
  0x38   :  { %108 = vst.msk [vmem:[#allocation10] sm:$0x1] %vm101_vm1, %v1141_v0  ;;  %v464_v22 = vrot.slane %v463_v17, 4  ;;  %v422_v23 = vrot.slane %v421_v16, 2  ;;  %v409_v24 = vsel %vm92_vm0, %v110_v18, 0.0  ;;  %1010 = vmatpush3.msra.mxu0 %v110_v18  ;;  %v112_v61 = vld [vmem:[%s86_s8] sm:$0xff] }
  0x39   :  { %v402_v25 = vadd.f32 %v401_v19, %v400_v13  ;;  %v443_v26 = vrot.slane %v442_v20, 2  ;;  %v454_v27 = vrot.slane %v453_v21, 2  ;;  %v410_v30 = vrot.slane %v409_v24, 4  ;;  %v397_v35 = vld [vmem:[#allocation4] sm:$0x1]  ;;  %1017 = vmatprep.subr.mxu1 %v112_v61  ;;  %s941_s26 = sshll.u32 %s1142_s25, 4  ;;  %s942_s26 = int_to_ptr.vmem [resolvable:$true] %s941_s26 }
  0x3a   :  { %v465_v28 = vadd.f32 %v464_v22, %v463_v17  ;;  %v423_v29 = vadd.f32 %v422_v23, %v421_v16  ;;  %v438_v43 = vld [vmem:[#allocation8] sm:$0x1]  ;;  %v429_v62 = vsel %vm92_vm0, %v112_v61, 0.0  ;;  %1018 = vmatpush3.msra.mxu1 %v112_v61  ;;  %s478_s12 = scalar_select %p477_p11, 1, 0 }
  0x3b   :  { %v403_v31 = vrot.slane %v402_v25, 1  ;;  %v444_v32 = vadd.f32 %v443_v26, %v442_v20  ;;  %v455_v33 = vadd.f32 %v454_v27, %v453_v21  ;;  %v411_v37 = vadd.f32 %v410_v30, %v409_v24  ;;  %s1111_s27 = scalar_lea.vmem %s942_s26, 128  ;;  %p1116_p13 = scmp.lt.s32.totalorder %s942_s26, %s942_s26 }
  0x3c   :  { %v466_v34 = vrot.slane %v465_v28, 2  ;;  %v424_v36 = vrot.slane %v423_v29, 1  ;;  %v430_v0 = vrot.slane %v429_v62, 4  ;;  %v259_v61 = vld [vmem:[#allocation3 + $0x18] sm:$0xff]  ;;  %s1302_s13 = scvt.s32.f32 %s478_s12  ;;  %p1112_p12 = scmp.ne.s32.totalorder %s942_s26, %s1111_s27 }
  0x3d   :  { %v404_v38 = vadd.f32 %v403_v31, %v402_v25  ;;  %v445_v39 = vrot.slane %v444_v32, 1  ;;  %v456_v40 = vrot.slane %v455_v33, 1  ;;  %v418_v41 = vld [vmem:[#allocation6] sm:$0x1]  ;;  %v412_v46 = vrot.slane %v411_v37, 2  ;;  %p1117_p0 = scmp.lt.s32.totalorder %s1111_s27, %s1111_s27 }
  0x3e   :  { %v467_v42 = vadd.f32 %v466_v34, %v465_v28  ;;  %v425_v44 = vadd.f32 %v424_v36, %v423_v29  ;;  %v449_v45 = vld [vmem:[#allocation9] sm:$0x1]  ;;  %v408_v59 = vld [vmem:[#allocation5] sm:$0x1]  ;;  %v428_v8 = vld [vmem:[#allocation7] sm:$0x1] }
  0x3f   :  { %v405_v47 = vadd.f32 %v404_v38, %v397_v35  ;;  %v446_v48 = vadd.f32 %v445_v39, %v444_v32  ;;  %v457_v49 = vadd.f32 %v456_v40, %v455_v33  ;;  %260 = vxpose.xlu0.b32.start.end [1/1] (short) (narrow) %v111_v2, 32  ;;  %v461_v52 = vld [vmem:[#allocation10] sm:$0x1]  ;;  %v413_v53 = vadd.f32 %v412_v46, %v411_v37  ;;  %s823_s15 = ssub.f32 2.0, %s1302_s13  ;;  %p1118_p1 = por %p1117_p0, %p1116_p13 }
  0x40   :  { %v468_v50 = vrot.slane %v467_v42, 1  ;;  %v426_v51 = vadd.f32 %v425_v44, %v418_v41  ;;  %v431_v2 = vadd.f32 %v430_v0, %v429_v62  ;;  %v258_v0 = vld [vmem:[#allocation3 + $0x10] sm:$0xff] }
  0x41   :  { %407 = vst.msk [vmem:[#allocation4] sm:$0x1] %vm101_vm1, %v405_v47  ;;  %v447_v54 = vadd.f32 %v446_v48, %v438_v43  ;;  %v458_v55 = vadd.f32 %v457_v49, %v449_v45  ;;  %v414_v57 = vrot.slane %v413_v53, 1  ;;  %v113_v43 = vld [vmem:[#allocation2] sm:$0xff]  ;;  %v116_v48 = vld [vmem:[#allocation2 + $0x18] sm:$0xff]  ;;  %v115_v49 = vld [vmem:[#allocation2 + $0x10] sm:$0xff]  ;;  %p1119_p2 = pnand %p1118_p1, %p1112_p12 }
  0x42   :  { %v469_v56 = vadd.f32 %v468_v50, %v467_v42  ;;  %427 = vst.msk [vmem:[#allocation6] sm:$0x1] %vm101_vm1, %v426_v51  ;;  %v432_v3 = vrot.slane %v431_v2, 2  ;;  %v114_v42 = vld [vmem:[#allocation2 + $0x8] sm:$0xff] }
  0x43   :  { %448 = vst.msk [vmem:[#allocation8] sm:$0x1] %vm101_vm1, %v447_v54  ;;  %459 = vst.msk [vmem:[#allocation9] sm:$0x1] %vm101_vm1, %v458_v55  ;;  %v415_v60 = vadd.f32 %v414_v57, %v413_v53  ;;  %v257_v55 = vld [vmem:[#allocation3 + $0x8] sm:$0xff] }
  0x44   :  { %v470_v58 = vadd.f32 %v469_v56, %v461_v52  ;;  %v433_v4 = vadd.f32 %v432_v3, %v431_v2  ;;  %v256_v56 = vld [vmem:[#allocation3] sm:$0xff] }
  0x45   :  { %v416_v63 = vadd.f32 %v415_v60, %v408_v59 }
  0x46   :  { %471 = vst.msk [vmem:[#allocation10] sm:$0x1] %vm101_vm1, %v470_v58  ;;  %v434_v5 = vrot.slane %v433_v4, 1 }
  0x47   :  { %417 = vst.msk [vmem:[#allocation5] sm:$0x1] %vm101_vm1, %v416_v63 }
  0x48   :  { %v480_v1 = vld [vmem:[#allocation4] sm:$0x1]  ;;  %v435_v7 = vadd.f32 %v434_v5, %v433_v4 }
  0x49   :  { %482 = vxpose.xlu1.b32.start.end [1/1] (short) (narrow) %v480_v1, 32  ;;  %v616_v10 = vld [vmem:[#allocation6] sm:$0x1]  ;;  %v826_v28 = vmul.f32 %v480_v1, %v480_v1 }
  0x4a   :  { %v436_v9 = vadd.f32 %v435_v7, %v428_v8  ;;  %v831_v30 = vmul.f32 %v616_v10, %v616_v10  ;;  %v825_v31 = vld [vmem:[#allocation8] sm:$0x1]  ;;  %v830_v34 = vld [vmem:[#allocation9] sm:$0x1] }
  0x4b   :  { %v827_v29 = vmul.f32 0.125, %v826_v28 }
  0x4c   :  { %437 = vst.msk [vmem:[#allocation7] sm:$0x1] %vm101_vm1, %v436_v9  ;;  %v832_v33 = vmul.f32 0.125, %v831_v30 }
  0x4d   :  { %v828_v32 = vsub.f32 %v825_v31, %v827_v29 }
  0x4e   :  { %v481_v6 = vld [vmem:[#allocation5] sm:$0x1]  ;;  %v833_v35 = vsub.f32 %v830_v34, %v832_v33 }
  0x4f   :  { %1025 = vmatprep.subr.msk.mxu0 %vm527_vm2, %v481_v6  ;;  %v829_v36 = vmul.f32 0.14285715, %v828_v32 }
  0x50   :  { %v834_v39 = vmul.f32 0.14285715, %v833_v35 }
  0x51   :  { %v835_v37 = vmul.f32 %v829_v36, %v829_v36  ;;  %v859_v54 = vadd.f32 0.01, %v829_v36 }
  0x52   :  { %v846_v40 = vmul.f32 %v834_v39, %v834_v39 }
  0x53   :  { %v617_v11 = vld [vmem:[#allocation7] sm:$0x1]  ;;  %v836_v38 = vsel %vm101_vm1, %v835_v37, 0.0  ;;  %1059 = vrsqrt.f32 %v859_v54  ;;  %vm862_vm5 = vcmp.eq.f32.partialorder %v859_v54, inf  ;;  %vm864_vm6 = vcmp.eq.f32.partialorder %v859_v54, 0.0 }
  0x54   :  { %1033 = vmatprep.subr.msk.mxu1 %vm527_vm2, %v617_v11  ;;  %v847_v41 = vsel %vm101_vm1, %v846_v40, 0.0 }
  0x56   :  { %618 = vxpose.xlu1.b32.start.end [1/1] (short) (narrow) %v616_v10, 32 }
  0x5d   :  { %v1060_v8 = vpop.eup %1059 }
  0x89   :  { %837 = vadd.xlane.f32.xlu1 %v836_v38 }
  0x8d   :  { %848 = vadd.xlane.f32.xlu1 %v847_v41 }
  0xb2   :  { %v133_v12 = vpop.trf.xlu0 }
  0xb3   :  { %1011 = vmatprep.mubr.msk.f32.mxu0 %vm149_vm3, %v133_v12 }
  0xb6   :  { %v134_v13 = vpop.trf.xlu0 }
  0xb7   :  { %1012 = vmatmul.mubr.msk.f32.vlgmr.msra.gmra.mrb[0].mxu0 %vm149_vm3, %v134_v13  ;;  %v1277_v13 = vadd.f32 0.01, %v834_v39 }
  0xb8   :  { %1026 = vmatpush3.msk.msra.mxu0 %vm527_vm2, %v481_v6 }
  0xb9   :  { %1061 = vrsqrt.f32 %v1277_v13  ;;  %vm870_vm7 = vcmp.eq.f32.partialorder %v1277_v13, inf  ;;  %vm872_vm8 = vcmp.eq.f32.partialorder %v1277_v13, 0.0 }
  0xba   :  { %v135_v14 = vpop.trf.xlu0 }
  0xbb   :  { %1014 = vmatprep.mubr.msk.f32.mxu0 %vm149_vm3, %v135_v14 }
  0xbe   :  { %v136_v15 = vpop.trf.xlu0 }
  0xbf   :  { %1015 = vmatmul.mubr.msk.f32.gmra.mrb[2].mxu0 %vm149_vm3, %v136_v15  ;;  %v861_v15 = vmul.f32 %v1060_v8, %v859_v54 }
  0xc2   :  { %v276_v16 = vpop.trf.xlu0 }
  0xc3   :  { %1019 = vmatprep.mubr.msk.f32.mxu1 %vm149_vm3, %v276_v16 }
  0xc6   :  { %v277_v17 = vpop.trf.xlu0 }
  0xc7   :  { %1020 = vmatmul.mubr.msk.f32.vlgmr.msra.gmra.mrb[0].mxu1 %vm149_vm3, %v277_v17 }
  0xc8   :  { %1034 = vmatpush3.msk.msra.mxu1 %vm527_vm2, %v617_v11 }
  0xc9   :  { %v498_v18 = vpop.trf.xlu1 }
  0xca   :  { %1027 = vmatprep.mubr.msk.f32.mxu0 %vm514_vm4, %v498_v18  ;;  %v278_v19 = vpop.trf.xlu0 }
  0xcb   :  { %1022 = vmatprep.mubr.msk.f32.mxu1 %vm149_vm3, %v278_v19 }
  0xcd   :  { %v499_v20 = vpop.trf.xlu1 }
  0xce   :  { %1028 = vmatmul.mubr.msk.f32.vlgmr.msra.gmra.mrb[4].mxu0 %vm514_vm4, %v499_v20  ;;  %v279_v21 = vpop.trf.xlu0 }
  0xcf   :  { %1023 = vmatmul.mubr.msk.f32.gmra.mrb[2].mxu1 %vm149_vm3, %v279_v21 }
  0xd1   :  { %v500_v22 = vpop.trf.xlu1 }
  0xd2   :  { %1030 = vmatprep.mubr.msk.f32.mxu0 %vm514_vm4, %v500_v22 }
  0xd5   :  { %v501_v23 = vpop.trf.xlu1 }
  0xd6   :  { %1031 = vmatmul.mubr.msk.f32.gmra.mrb[6].mxu0 %vm514_vm4, %v501_v23 }
  0xd9   :  { %v634_v24 = vpop.trf.xlu1 }
  0xda   :  { %1035 = vmatprep.mubr.msk.f32.mxu1 %vm514_vm4, %v634_v24  ;;  %v865_v24 = vand.u32 2147483648, %v859_v54 }
  0xdd   :  { %v635_v25 = vpop.trf.xlu1 }
  0xde   :  { %1036 = vmatmul.mubr.msk.f32.vlgmr.msra.gmra.mrb[4].mxu1 %vm514_vm4, %v635_v25 }
  0xe1   :  { %v636_v26 = vpop.trf.xlu1 }
  0xe2   :  { %1038 = vmatprep.mubr.msk.f32.mxu1 %vm514_vm4, %v636_v26 }
  0xe5   :  { %v637_v27 = vpop.trf.xlu1 }
  0xe6   :  { %1039 = vmatmul.mubr.msk.f32.gmra.mrb[6].mxu1 %vm514_vm4, %v637_v27  ;;  %v863_v27 = vsel %vm862_vm5, %v859_v54, %v861_v15 }
  0xe7   :  { %v866_v32 = vsel %vm864_vm6, %v865_v24, %v863_v27 }
  0xe8   :  { %v875_v38 = vsub.f32 1.0, %v866_v32 }
 0x18a   :  { %v1013_v44 = vpop.f32.mrb[0].mxu0 }
 0x18b   :  { %v248_v45 = vadd.f32 %v1013_v44, %v114_v42  ;;  %v228_v46 = vpop.f32.mrb[1].mxu0  ;;  %v1062_v44 = vpop.eup %1061 }
 0x18c   :  { %v247_v47 = vadd.f32 %v228_v46, %v113_v43 }
 0x18d   :  { %253 = vst.msk [vmem:[#allocation2 + $0x8] sm:$0xff] %vm92_vm0, %v248_v45 }
 0x18e   :  { %252 = vst.msk [vmem:[#allocation2] sm:$0xff] %vm92_vm0, %v247_v47 }
 0x192   :  { %v1016_v50 = vpop.f32.mrb[2].mxu0 }
 0x193   :  { %v250_v51 = vadd.f32 %v1016_v50, %v116_v48  ;;  %v238_v52 = vpop.f32.mrb[3].mxu0 }
 0x194   :  { %v249_v53 = vadd.f32 %v238_v52, %v115_v49  ;;  %v751_v63 = vld [vmem:[#allocation2 + $0x8] sm:$0xff]  ;;  %v876_v49 = vmax.f32 %v875_v38, 0.0 }
 0x195   :  { %255 = vst.msk [vmem:[#allocation2 + $0x18] sm:$0xff] %vm92_vm0, %v250_v51  ;;  %v750_v3 = vld [vmem:[#allocation2] sm:$0xff] }
 0x196   :  { %254 = vst.msk [vmem:[#allocation2 + $0x10] sm:$0xff] %vm92_vm0, %v249_v53  ;;  %v869_v53 = vmul.f32 %v1062_v44, %v1277_v13 }
 0x19a   :  { %v1021_v57 = vpop.f32.mrb[0].mxu1 }
 0x19b   :  { %v390_v58 = vadd.f32 %v1021_v57, %v257_v55  ;;  %v370_v59 = vpop.f32.mrb[1].mxu1 }
 0x19c   :  { %v389_v60 = vadd.f32 %v370_v59, %v256_v56  ;;  %v753_v19 = vld [vmem:[#allocation2 + $0x18] sm:$0xff]  ;;  %v873_v59 = vand.u32 2147483648, %v1277_v13 }
 0x19d   :  { %394 = vst.msk [vmem:[#allocation3 + $0x8] sm:$0xff] %vm92_vm0, %v390_v58  ;;  %v752_v23 = vld [vmem:[#allocation2 + $0x10] sm:$0xff]  ;;  %v877_v58 = vsel %vm101_vm1, %v876_v49, 0.0 }
 0x19e   :  { %393 = vst.msk [vmem:[#allocation3] sm:$0xff] %vm92_vm0, %v389_v60 }
 0x1a1   :  { %v1029_v62 = vpop.f32.mrb[4].mxu0 }
 0x1a2   :  { %v755_v1 = vmul.f32 0.125, %v1029_v62  ;;  %v597_v2 = vpop.f32.mrb[5].mxu0  ;;  %v1024_v4 = vpop.f32.mrb[2].mxu1 }
 0x1a3   :  { %v754_v5 = vmul.f32 0.125, %v597_v2  ;;  %v392_v6 = vadd.f32 %v1024_v4, %v259_v61  ;;  %v380_v7 = vpop.f32.mrb[3].mxu1 }
 0x1a4   :  { %v759_v9 = vsub.f32 %v751_v63, %v755_v1  ;;  %v391_v10 = vadd.f32 %v380_v7, %v258_v0  ;;  %v767_v37 = vld [vmem:[#allocation3 + $0x8] sm:$0xff]  ;;  %v901_v0 = vld [vmem:[#allocation10] sm:$0x1] }
 0x1a5   :  { %v758_v11 = vsub.f32 %v750_v3, %v754_v5  ;;  %396 = vst.msk [vmem:[#allocation3 + $0x18] sm:$0xff] %vm92_vm0, %v392_v6  ;;  %v766_v41 = vld [vmem:[#allocation3] sm:$0xff]  ;;  %v871_v3 = vsel %vm870_vm7, %v1277_v13, %v869_v53  ;;  %v902_v7 = vsel %vm101_vm1, %v901_v0, 0.0 }
 0x1a6   :  { %v763_v12 = vmul.f32 0.14285715, %v759_v9  ;;  %395 = vst.msk [vmem:[#allocation3 + $0x10] sm:$0xff] %vm92_vm0, %v391_v10  ;;  %v874_v9 = vsel %vm872_vm8, %v873_v59, %v871_v3 }
 0x1a7   :  { %v762_v14 = vmul.f32 0.14285715, %v758_v11 }
 0x1a8   :  { %v783_v16 = vmul.f32 %v763_v12, %v763_v12 }
 0x1a9   :  { %v782_v17 = vmul.f32 %v762_v14, %v762_v14  ;;  %v1032_v18 = vpop.f32.mrb[6].mxu0  ;;  %v887_v14 = vsub.f32 1.0, %v874_v9 }
 0x1aa   :  { %v787_v20 = vsel %vm92_vm0, %v783_v16, 0.0  ;;  %v757_v21 = vmul.f32 0.125, %v1032_v18  ;;  %v607_v22 = vpop.f32.mrb[7].mxu0 }
 0x1ab   :  { %v786_v25 = vsel %vm92_vm0, %v782_v17, 0.0  ;;  %v756_v26 = vmul.f32 0.125, %v607_v22  ;;  %v888_v18 = vmax.f32 %v887_v14, 0.0 }
 0x1ac   :  { %v761_v28 = vsub.f32 %v753_v19, %v757_v21  ;;  %v788_v29 = vadd.f32 %v787_v20, %v786_v25  ;;  %v769_v57 = vld [vmem:[#allocation3 + $0x18] sm:$0xff]  ;;  %v838_v21 = vpop.xlane.xlu1 %837 }
 0x1ad   :  { %v760_v30 = vsub.f32 %v752_v23, %v756_v26  ;;  %v768_v63 = vld [vmem:[#allocation3 + $0x10] sm:$0xff]  ;;  %v889_v19 = vsel %vm101_vm1, %v888_v18, 0.0 }
 0x1ae   :  { %v765_v31 = vmul.f32 0.14285715, %v761_v28  ;;  %v839_v28 = vrot.slane %v838_v21, 4 }
 0x1af   :  { %v764_v33 = vmul.f32 0.14285715, %v760_v30 }
 0x1b0   :  { %v785_v34 = vmul.f32 %v765_v31, %v765_v31  ;;  %v849_v26 = vpop.xlane.xlu1 %848 }
 0x1b1   :  { %v784_v35 = vmul.f32 %v764_v33, %v764_v33  ;;  %v1037_v36 = vpop.f32.mrb[4].mxu1 }
 0x1b2   :  { %v771_v39 = vmul.f32 0.125, %v1037_v36  ;;  %v731_v40 = vpop.f32.mrb[5].mxu1  ;;  %v791_v48 = vsel %vm92_vm0, %v785_v34, 0.0  ;;  %v840_v34 = vadd.f32 %v839_v28, %v838_v21 }
 0x1b3   :  { %v770_v42 = vmul.f32 0.125, %v731_v40  ;;  %v789_v43 = vsel %vm92_vm0, %v784_v35, 0.0 }
 0x1b4   :  { %v775_v45 = vsub.f32 %v767_v37, %v771_v39  ;;  %v790_v46 = vadd.f32 %v789_v43, %v788_v29  ;;  %v850_v29 = vrot.slane %v849_v26, 4  ;;  %v841_v38 = vrot.slane %v840_v34, 2 }
 0x1b5   :  { %v774_v47 = vsub.f32 %v766_v41, %v770_v42 }
 0x1b6   :  { %v779_v50 = vmul.f32 0.14285715, %v775_v45  ;;  %v792_v51 = vadd.f32 %v791_v48, %v790_v46  ;;  %v851_v36 = vadd.f32 %v850_v29, %v849_v26 }
 0x1b7   :  { %v778_v52 = vmul.f32 0.14285715, %v774_v47  ;;  %v842_v47 = vadd.f32 %v841_v38, %v840_v34 }
 0x1b8   :  { %v803_v54 = vmul.f32 %v779_v50, %v779_v50  ;;  %793 = vadd.xlane.f32.xlu0 %v792_v51  ;;  %v852_v41 = vrot.slane %v851_v36, 2 }
 0x1b9   :  { %v802_v55 = vmul.f32 %v778_v52, %v778_v52  ;;  %v1040_v56 = vpop.f32.mrb[6].mxu1 }
 0x1ba   :  { %v807_v60 = vsel %vm92_vm0, %v803_v54, 0.0  ;;  %v773_v61 = vmul.f32 0.125, %v1040_v56  ;;  %v741_v62 = vpop.f32.mrb[7].mxu1  ;;  %v853_v50 = vadd.f32 %v852_v41, %v851_v36 }
 0x1bb   :  { %v806_v1 = vsel %vm92_vm0, %v802_v55, 0.0  ;;  %v772_v2 = vmul.f32 0.125, %v741_v62  ;;  %v843_v55 = vrot.slane %v842_v47, 1 }
 0x1bc   :  { %v777_v4 = vsub.f32 %v769_v57, %v773_v61  ;;  %878 = vadd.xlane.f32.xlu0 %v877_v58  ;;  %v808_v5 = vadd.f32 %v807_v60, %v806_v1  ;;  %v854_v58 = vrot.slane %v853_v50, 1 }
 0x1bd   :  { %v776_v6 = vsub.f32 %v768_v63, %v772_v2  ;;  %v844_v62 = vadd.f32 %v843_v55, %v842_v47 }
 0x1be   :  { %v781_v8 = vmul.f32 0.14285715, %v777_v4  ;;  %v855_v0 = vadd.f32 %v854_v58, %v853_v50 }
 0x1bf   :  { %v780_v10 = vmul.f32 0.14285715, %v776_v6 }
 0x1c0   :  { %903 = vadd.xlane.f32.xlu0 %v902_v7  ;;  %v805_v11 = vmul.f32 %v781_v8, %v781_v8 }
 0x1c1   :  { %v804_v12 = vmul.f32 %v780_v10, %v780_v10 }
 0x1c2   :  { %v811_v17 = vsel %vm92_vm0, %v805_v11, 0.0 }
 0x1c3   :  { %v809_v15 = vsel %vm92_vm0, %v804_v12, 0.0 }
 0x1c4   :  { %v810_v16 = vadd.f32 %v809_v15, %v808_v5  ;;  %v913_v5 = vlaneseq }
 0x1c6   :  { %v812_v13 = vadd.f32 %v811_v17, %v810_v16  ;;  %v914_v6 = vshrl.u32 %v913_v5, 7  ;;  %v916_v7 = vand.u32 127, %v913_v5 }
 0x1c8   :  { %813 = vadd.xlane.f32.xlu1 %v812_v13  ;;  %vm917_vm9 = vcmp.eq.s32.totalorder %v916_v7, 0  ;;  %vm924_vm10 = vcmp.eq.s32.totalorder %v914_v6, 3  ;;  %vm922_vm11 = vcmp.eq.s32.totalorder %v914_v6, 2  ;;  %vm920_vm13 = vcmp.eq.s32.totalorder %v914_v6, 1 }
 0x1c9   :  { %vm925_vm12 = vmand %vm924_vm10, %vm917_vm9  ;;  %vm918_vm14 = vcmp.eq.s32.totalorder %v914_v6, 0 }
 0x1ca   :  { %vm923_vm15 = vmand %vm922_vm11, %vm917_vm9 }
 0x1cb   :  { %vm921_vm0 = vmand %vm920_vm13, %vm917_vm9 }
 0x1cc   :  { %890 = vadd.xlane.f32.xlu1 %v889_v19  ;;  %vm919_vm1 = vmand %vm918_vm14, %vm917_vm9 }
 0x245   :  { %v794_v20 = vpop.xlane.xlu0 %793 }
 0x246   :  { %v795_v22 = vrot.slane %v794_v20, 4 }
 0x248   :  { %v796_v23 = vadd.f32 %v795_v22, %v794_v20 }
 0x249   :  { %v879_v24 = vpop.xlane.xlu0 %878 }
 0x24a   :  { %v797_v25 = vrot.slane %v796_v23, 2  ;;  %v880_v32 = vrot.slane %v879_v24, 4 }
 0x24c   :  { %v798_v27 = vadd.f32 %v797_v25, %v796_v23  ;;  %v881_v37 = vadd.f32 %v880_v32, %v879_v24 }
 0x24d   :  { %v904_v31 = vpop.xlane.xlu0 %903 }
 0x24e   :  { %v799_v30 = vrot.slane %v798_v27, 1  ;;  %v905_v35 = vrot.slane %v904_v31, 4  ;;  %v882_v43 = vrot.slane %v881_v37, 2 }
 0x250   :  { %v800_v33 = vadd.f32 %v799_v30, %v798_v27  ;;  %v906_v40 = vadd.f32 %v905_v35, %v904_v31  ;;  %v883_v51 = vadd.f32 %v882_v43, %v881_v37 }
 0x252   :  { %1041 = vpush %v800_v33  ;;  %v907_v45 = vrot.slane %v906_v40, 2  ;;  %v884_v59 = vrot.slane %v883_v51, 1 }
 0x254   :  { %v908_v54 = vadd.f32 %v907_v45, %v906_v40  ;;  %v885_v2 = vadd.f32 %v884_v59, %v883_v51 }
 0x255   :  { %v814_v39 = vpop.xlane.xlu1 %813 }
 0x256   :  { %v815_v42 = vrot.slane %v814_v39, 4  ;;  %v909_v63 = vrot.slane %v908_v54, 1 }
 0x258   :  { %v816_v44 = vadd.f32 %v815_v42, %v814_v39  ;;  %v910_v4 = vadd.f32 %v909_v63, %v908_v54 }
 0x259   :  { %v891_v46 = vpop.xlane.xlu1 %890 }
 0x25a   :  { %v817_v48 = vrot.slane %v816_v44, 2  ;;  %v892_v49 = vrot.slane %v891_v46, 4 }
 0x25c   :  { %v893_v52 = vadd.f32 %v892_v49, %v891_v46  ;;  %v818_v53 = vadd.f32 %v817_v48, %v816_v44 }
 0x25e   :  { %v894_v56 = vrot.slane %v893_v52, 2  ;;  %v819_v57 = vrot.slane %v818_v53, 1 }
 0x260   :  { %v895_v60 = vadd.f32 %v894_v56, %v893_v52  ;;  %v820_v61 = vadd.f32 %v819_v57, %v818_v53 }
 0x262   :  { %1043 = vpush %v820_v61  ;;  %v896_v1 = vrot.slane %v895_v60, 1 }
 0x263   :  { %1045 = vpush %v844_v62 }
 0x264   :  { %1047 = vpush %v855_v0  ;;  %v897_v3 = vadd.f32 %v896_v1, %v895_v60 }
 0x265   :  { %1049 = vpush %v885_v2 }
 0x266   :  { %1051 = vpush %v897_v3 }
 0x267   :  { %1053 = vpush %v910_v4 }
 0x283   :  { %s1042_s14 = spop %1041 }
 0x293   :  { %s1044_s2 = spop %1043 }
 0x294   :  { %s822_s16 = sadd.f32 %s1044_s2, %s1042_s14  ;;  %s1046_s17 = spop %1045 }
 0x295   :  { %s1048_s18 = spop %1047 }
 0x296   :  { %s824_s19 = smul.f32 %s823_s15, %s822_s16  ;;  %s857_s0 = sadd.f32 %s1048_s18, %s1046_s17 }
 0x297   :  { %s1050_s1 = spop %1049 }
 0x298   :  { %s858_s20 = smul.f32 %s857_s0, %s1302_s13  ;;  %s1052_s21 = spop %1051  ;;  %v928_v8 = vstv %s824_s19 }
 0x299   :  { %s899_s22 = sadd.f32 %s1052_s21, %s1050_s1  ;;  %s1054_s4 = spop %1053 }
 0x29a   :  { %v926_v9 = vstv %s858_s20  ;;  %s912_s23 = smul.f32 %s1054_s4, %s1302_s13 }
 0x29b   :  { %v927_v10 = vsel %vm925_vm12, %v926_v9, 0.0  ;;  %s900_s24 = smul.f32 %s899_s22, %s1302_s13 }
 0x29c   :  { %v929_v11 = vsel %vm923_vm15, %v928_v8, %v927_v10  ;;  %v932_v14 = vstv %s912_s23 }
 0x29d   :  { %v930_v12 = vstv %s900_s24 }
 0x29e   :  { %v931_v15 = vsel %vm921_vm0, %v930_v12, %v929_v11 }
 0x29f   :  { %v933_v16 = vsel %vm919_vm1, %v932_v14, %v931_v15 }
 0x2a0   :  { %934 = vst [vmem:[#allocation19] sm:$0xff] %v933_v16 }
 0x2a1   :  { %1122 = shalt.err (!%p1119_p2)
}
 0x2a2   :  { %s1123_s30 = scalar_lea.hbm %s1330_s6, 128 }
 0x2a3   :  { %p1124_p3 = scmp.ne.s32.totalorder %s1330_s6, %s1123_s30  ;;  %p1127_p4 = scmp.lt.u32.totalorder %s1123_s30, %s1330_s6 }
 0x2a5   :  { %p1129_p5 = pnand %p1127_p4, %p1124_p3 }
 0x2a7   :  { %1132 = shalt.err (!%p1129_p5)
}
 0x2a8   :  { %944 = dma.vmem_to_hbm [thread:$0]  %s942_s26, 128, %s1330_s6, [#allocation16]  }
 0x2a9   :  { %1137 = dma.done.wait [#allocation16], 128  }
 0x2aa   :  { %1138 = vsyncadd [#allocation16], 4294967168 }
 0x2ab   :  { %948 = vsyncpa [#allocation15], 1 }
 0x2ac   :  { %949 = vsyncpa [#allocation18], 1 }
 0x2ad   :  { %950 = vsyncpa [#allocation16], 1 }

</bundles_post_ra>
